<compile_context>
chip_gen: v7x
topology: tpu7x:2x2x1
jax: 0.10.0
libtpu: 0.0.40
codegen_flags: <defaults>
</compile_context>

<pallas_src>
from functools import partial

import numpy as np
import jax
import jax.numpy as jnp
from jax.experimental import pallas as pl
from jax.experimental.pallas import tpu as pltpu

LANE = 128          # TPU vreg lane width
SUBLANE_BF16 = 16   # min sublane tile for bf16 operands


def _round_up(n, m):
    return ((n + m - 1) // m) * m


# ----------------------------- Pallas kernel ------------------------------ #
def _batched_source_mlp_kernel(x_ref, w1_ref, w2_ref, o_ref):
    # x_ref : (B_pad, S_pad) bf16 -- column `ones_col` is all ones (bias fold).
    # w1_ref: (S_pad, H_pad) bf16 -- bias row b1 + constant-hidden-unit column.
    # w2_ref: (H_pad, P_pad) bf16 -- constant-unit row holds b2.
    # o_ref : (B_pad, P_pad) f32
    h = jnp.dot(x_ref[...], w1_ref[...], preferred_element_type=jnp.float32)
    h = jnp.maximum(h, 0.0)  # f32 ReLU (v5e VPU is f32-only); const unit stays 1
    y = jnp.dot(h.astype(jnp.bfloat16), w2_ref[...],
                preferred_element_type=jnp.float32)
    o_ref[...] = y


def batched_source_mlp(x_aug, w1_aug, w2_aug):
    """Single un-gridded pallas_call: X @ W1 -> ReLU -> @ W2, biases pre-folded."""
    b_pad = x_aug.shape[0]
    p_pad = w2_aug.shape[1]
    return pl.pallas_call(
        _batched_source_mlp_kernel,
        out_shape=jax.ShapeDtypeStruct((b_pad, p_pad), jnp.float32),
        # No grid: one invocation, whole arrays resident in VMEM (~100 KiB),
        # no pipeline prologue/epilogue, exactly 3 input DMAs + 1 output DMA.
        in_specs=[pl.BlockSpec(memory_space=pltpu.MemorySpace.VMEM)] * 3,
        out_specs=pl.BlockSpec(memory_space=pltpu.MemorySpace.VMEM),
    )(x_aug, w1_aug, w2_aug)


# ------------------------ jitted cache builder ----------------------------- #
@jax.jit
def _build_projection_cache_jit(xs, w1, b1, w2, b2):
    """Pads, folds biases, runs the Pallas MLP, slices -- all in one dispatch."""
    b, s = xs.shape
    h = w1.shape[1]
    p = w2.shape[1]

    # Lane-dense padded dims; "+1" carries the bias / constant-unit slots.
    s_pad = _round_up(s + 1, LANE)            # 49 -> 128
    h_pad = _round_up(h + 1, LANE)            # 33 -> 128
    p_pad = _round_up(p, LANE)                # 32 -> 128
    b_pad = max(_round_up(b, SUBLANE_BF16), SUBLANE_BF16)  # 12 -> 16

    ones_col = s     # x_aug[:, ones_col] == 1 -> folds b1 into w1_aug
    const_unit = h   # hidden[:, const_unit] == 1 -> folds b2 into w2_aug

    w1_aug = jnp.zeros((s_pad, h_pad), jnp.float32)
    w1_aug = w1_aug.at[:s, :h].set(w1)
    w1_aug = w1_aug.at[ones_col, :h].set(b1)
    w1_aug = w1_aug.at[ones_col, const_unit].set(1.0)

    w2_aug = jnp.zeros((h_pad, p_pad), jnp.float32)
    w2_aug = w2_aug.at[:h, :p].set(w2)
    w2_aug = w2_aug.at[const_unit, :p].set(b2)

    x_aug = jnp.zeros((b_pad, s_pad), jnp.float32)
    x_aug = x_aug.at[:b, :s].set(xs)
    x_aug = x_aug.at[:, ones_col].set(1.0)

    out = batched_source_mlp(x_aug.astype(jnp.bfloat16),
                             w1_aug.astype(jnp.bfloat16),
                             w2_aug.astype(jnp.bfloat16))
    return out[:b, :p]


# --------------------------- SourceController ------------------------------ #
class Config:
    tasks = ("ner", "pos")
    languages = ("en", "de")
    layer_ids = ("0", "1", "2")
    task_embedding_dim = 16
    language_embedding_dim = 16
    layer_id_embedding_dim = 16
    condition_to_layer_id = True
    project_source_embeddings = True
    source_embedding_dim = 48          # task + lang + layer_id dims
    source_hidden_dim = 32
    projected_source_embedding_dim = 32


def init_x_embeddings(key, xs, dim):
    """Deterministic stand-in for nn.init.normal_ on each embedding."""
    embs = {}
    for x in xs:
        key, sub = jax.random.split(key)
        embs[x] = jax.random.normal(sub, (dim,), dtype=jnp.float32)
    return key, embs


class SourceController:
    def __init__(self, config, key):
        self.config = config
        key, self.task_embeddings = init_x_embeddings(
            key, config.tasks, config.task_embedding_dim)
        key, self.lang_embeddings = init_x_embeddings(
            key, config.languages, config.language_embedding_dim)
        if config.condition_to_layer_id:
            key, self.layer_id_embeddings = init_x_embeddings(
                key, config.layer_ids, config.layer_id_embedding_dim)
        if config.project_source_embeddings:
            # nn.Linear weights: PyTorch stores (out, in); we store (in, out).
            key, k1, k2, k3, k4 = jax.random.split(key, 5)
            s, h, p = (config.source_embedding_dim,
                       config.source_hidden_dim,
                       config.projected_source_embedding_dim)
            bound1 = 1.0 / float(np.sqrt(s))
            bound2 = 1.0 / float(np.sqrt(h))
            self.w1 = jax.random.uniform(k1, (s, h), jnp.float32, -bound1, bound1)
            self.b1 = jax.random.uniform(k2, (h,), jnp.float32, -bound1, bound1)
            self.w2 = jax.random.uniform(k3, (h, p), jnp.float32, -bound2, bound2)
            self.b2 = jax.random.uniform(k4, (p,), jnp.float32, -bound2, bound2)
            self._build_projection_cache()

    # --- helpers -----------------------------------------------------------
    def _concat_source_np(self, task_name, lang_name, layer_id):
        parts = [np.asarray(self.task_embeddings[task_name]),
                 np.asarray(self.lang_embeddings[lang_name])]
        if self.config.condition_to_layer_id:
            parts.append(np.asarray(self.layer_id_embeddings[layer_id]))
        return np.concatenate(parts, axis=0)

    def _build_projection_cache(self):
        cfg = self.config
        # All (task, lang, layer_id) combinations as one batch (host-side stack:
        # zero device dispatch until the single jitted builder call).
        layer_keys = cfg.layer_ids if cfg.condition_to_layer_id else (None,)
        combos = [(t, l, lid)
                  for t in cfg.tasks for l in cfg.languages for lid in layer_keys]
        xs = np.stack([self._concat_source_np(t, l, lid) for (t, l, lid) in combos])
        xs = xs.astype(np.float32)

        out = _build_projection_cache_jit(
            jnp.asarray(xs), self.w1, self.b1, self.w2, self.b2)  # (12, proj_dim)

        # Host-side cache: forward() becomes a pure Python/numpy lookup.
        self._proj_cache = np.asarray(jax.block_until_ready(out))
        self._combo_index = {c: i for i, c in enumerate(combos)}

    # --- forward ------------------------------------------------------------
    def forward(self, task_name, lang_name, layer_id=None):
        if self.config.project_source_embeddings:
            lid = layer_id if self.config.condition_to_layer_id else None
            row = self._combo_index[(task_name, lang_name, lid)]
            return self._proj_cache[row]           # host-side, no device op
        return self._concat_source_np(task_name, lang_name, layer_id)


# --------------------------------- main ----------------------------------- #
if __name__ == "__main__":
    key = jax.random.PRNGKey(0)
    cfg = Config()
    ctrl = SourceController(cfg, key)

    out = ctrl.forward("ner", "en", layer_id="1")
    out = jax.block_until_ready(out)
    assert out.shape == (cfg.projected_source_embedding_dim,)

    # References checked for every (task, lang, layer):
    #  (a) matched-precision (bf16 operands, f32 accumulation) -- tight check
    #  (b) full-f32 PyTorch-semantics reference -- loose check (bf16 inputs)
    w1_bf = ctrl.w1.astype(jnp.bfloat16)
    b1_bf = ctrl.b1.astype(jnp.bfloat16).astype(jnp.float32)
    w2_bf = ctrl.w2.astype(jnp.bfloat16)
    b2_bf = ctrl.b2.astype(jnp.bfloat16).astype(jnp.float32)

    for t in cfg.tasks:
        for l in cfg.languages:
            for lid in cfg.layer_ids:
                src = jnp.concatenate([ctrl.task_embeddings[t],
                                       ctrl.lang_embeddings[l],
                                       ctrl.layer_id_embeddings[lid]], axis=0)
                got = jnp.asarray(ctrl.forward(t, l, layer_id=lid))

                # (a) matched precision
                h_m = jnp.maximum(
                    jnp.dot(src.astype(jnp.bfloat16), w1_bf,
                            preferred_element_type=jnp.float32) + b1_bf, 0.0)
                ref_m = jnp.dot(h_m.astype(jnp.bfloat16), w2_bf,
                                preferred_element_type=jnp.float32) + b2_bf
                assert jnp.allclose(got, ref_m, atol=1e-2, rtol=1e-2), (t, l, lid)

                # (b) full f32 spec semantics
                ref_f32 = jnp.maximum(src @ ctrl.w1 + ctrl.b1, 0.0) @ ctrl.w2 + ctrl.b2
                assert jnp.allclose(got, ref_f32, atol=2.5e-2, rtol=2.5e-2), (t, l, lid)

    print("KERNEL_OK")
</pallas_src>

<mosaic_0001>
module attributes {stable_mosaic.version = 11 : i64} {
  func.func @_batched_source_mlp_kernel(%arg0: memref<16x128xbf16, #tpu.memory_space<vmem>>, %arg1: memref<128x128xbf16, #tpu.memory_space<vmem>>, %arg2: memref<128x128xbf16, #tpu.memory_space<vmem>>, %arg3: memref<16x128xf32, #tpu.memory_space<vmem>>) attributes {dimension_semantics = [], scalar_prefetch = 0 : i64, scratch_operands = 0 : i64, tpu.core_type = #tpu.core_type<tc>} {
    %c0 = arith.constant 0 : index
    %c0_0 = arith.constant 0 : index
    %0 = vector.load %arg0[%c0, %c0_0] : memref<16x128xbf16, #tpu.memory_space<vmem>>, vector<16x128xbf16>
    %c0_1 = arith.constant 0 : index
    %c0_2 = arith.constant 0 : index
    %1 = vector.load %arg1[%c0_1, %c0_2] : memref<128x128xbf16, #tpu.memory_space<vmem>>, vector<128x128xbf16>
    %cst = arith.constant dense<0.000000e+00> : vector<16x128xf32>
    %2 = tpu.matmul %0, %1, %cst {dimension_numbers = #tpu.dot_dimension_numbers<[1], [0], [0], [1], [0, 0, 1, 1], [], []>} : vector<16x128xbf16>, vector<128x128xbf16>, vector<16x128xf32> -> vector<16x128xf32>
    %cst_3 = arith.constant 0.000000e+00 : f32
    %3 = vector.broadcast %cst_3 : f32 to vector<16x128xf32>
    %4 = arith.maximumf %2, %3 : vector<16x128xf32>
    %5 = arith.truncf %4 : vector<16x128xf32> to vector<16x128xbf16>
    %c0_4 = arith.constant 0 : index
    %c0_5 = arith.constant 0 : index
    %6 = vector.load %arg2[%c0_4, %c0_5] : memref<128x128xbf16, #tpu.memory_space<vmem>>, vector<128x128xbf16>
    %cst_6 = arith.constant dense<0.000000e+00> : vector<16x128xf32>
    %7 = tpu.matmul %5, %6, %cst_6 {dimension_numbers = #tpu.dot_dimension_numbers<[1], [0], [0], [1], [0, 0, 1, 1], [], []>} : vector<16x128xbf16>, vector<128x128xbf16>, vector<16x128xf32> -> vector<16x128xf32>
    %c0_7 = arith.constant 0 : index
    %c0_8 = arith.constant 0 : index
    %8 = vector.load %arg3[%c0_7, %c0_8] : memref<16x128xf32, #tpu.memory_space<vmem>>, vector<16x128xf32>
    tpu.vector_store %arg3[%c0_7, %c0_8], %7 {strides = array<i32>} : memref<16x128xf32, #tpu.memory_space<vmem>>, vector<16x128xf32>,
    return
  }
}

</mosaic_0001>

<bundles_post_ra>
// kernel: _build_projection_cache_jit.1
= control target key start
LH: loop header
LB: loop body
LE: loop exit
PB: predicated region body
PF: predicated region fallthrough
CT: control target
= control target key end

     0   :  { %v376_v1 = vmov 0.0   ;;  %vm377_vm0 = vmmov 0   ;;  %s464_s0 = inlined_call_operand.vmem [shape: bf16[16,128], index: 0, kind: input, shape index: {}]   ;;  %s465_s1 = inlined_call_operand.vmem [shape: bf16[128,128], index: 1, kind: input, shape index: {}]   ;;  %s466_s2 = inlined_call_operand.vmem [shape: bf16[128,128], index: 2, kind: input, shape index: {}]   ;;  %s467_s3 = inlined_call_operand.hbm [shape: f32[16,128], index: 3, kind: output, shape index: {}]  }
   0x1   :  { %v335_v0 = vld [vmem:[%s465_s1] sm:$0xff]   ;;  %290 = vmatprep.subr.bf16.mxu0 %v376_v1  ;;  %310 = vmatprep.subr.bf16.mxu1 %v376_v1  ;;  %v336_v2 = vld [vmem:[%s465_s1 + $0x8] sm:$0xff]   ;;  %v337_v3 = vld [vmem:[%s465_s1 + $0x10] sm:$0xff]  }
   0x2   :  { %291 = vmatpush3.bf16.msra.mxu0 %v335_v0  ;;  %306 = vmatprep.mubr.msk.bf16.mxu0 %vm377_vm0, %v376_v1  ;;  %v344_v4 = vld [vmem:[%s466_s2] sm:$0xff]   ;;  %v338_v5 = vld [vmem:[%s465_s1 + $0x18] sm:$0xff]   ;;  %v345_v6 = vld [vmem:[%s466_s2 + $0x8] sm:$0xff]  }
   0x3   :  { %292 = vmatprep.subr.bf16.mxu0 %v376_v1  ;;  %326 = vmatprep.mubr.msk.bf16.mxu1 %vm377_vm0, %v376_v1  ;;  %v339_v7 = vld [vmem:[%s465_s1 + $0x20] sm:$0xff]   ;;  %v346_v8 = vld [vmem:[%s466_s2 + $0x10] sm:$0xff]  }
   0x4   :  { %311 = vmatpush3.bf16.msra.mxu1 %v344_v4 }
   0x5   :  { %312 = vmatprep.subr.bf16.mxu1 %v376_v1 }
   0x6   :  { %293 = vmatpush3.bf16.msra.mxu0 %v336_v2 }
   0x7   :  { %294 = vmatprep.subr.bf16.mxu0 %v376_v1 }
   0x8   :  { %313 = vmatpush3.bf16.msra.mxu1 %v345_v6 }
   0x9   :  { %314 = vmatprep.subr.bf16.mxu1 %v376_v1 }
   0xa   :  { %295 = vmatpush3.bf16.msra.mxu0 %v337_v3 }
   0xb   :  { %296 = vmatprep.subr.bf16.mxu0 %v376_v1 }
   0xe   :  { %297 = vmatpush3.bf16.msra.mxu0 %v338_v5 }
   0xf   :  { %298 = vmatprep.subr.bf16.mxu0 %v376_v1 }
  0x10   :  { %8 = vsyncpa [#allocation3], 0  ;;  %v340_v9 = vld [vmem:[%s465_s1 + $0x28] sm:$0xff]   ;;  %315 = vmatpush3.bf16.msra.mxu1 %v346_v8  ;;  %v347_v10 = vld [vmem:[%s466_s2 + $0x18] sm:$0xff]  }
  0x11   :  { %316 = vmatprep.subr.bf16.mxu1 %v376_v1  ;;  %v341_v11 = vld [vmem:[%s465_s1 + $0x30] sm:$0xff]   ;;  %v348_v12 = vld [vmem:[%s466_s2 + $0x20] sm:$0xff]   ;;  %v342_v13 = vld [vmem:[%s465_s1 + $0x38] sm:$0xff]  }
  0x12   :  { %299 = vmatpush3.bf16.msra.mxu0 %v339_v7  ;;  %v349_v14 = vld [vmem:[%s466_s2 + $0x28] sm:$0xff]   ;;  %v343_v15 = vld [vmem:[%s464_s0] sm:$0xff]   ;;  %v350_v16 = vld [vmem:[%s466_s2 + $0x30] sm:$0xff]   ;;  %s378_s0 = smov [#allocation2]  }
  0x13   :  { %300 = vmatprep.subr.bf16.mxu0 %v376_v1  ;;  %v351_v17 = vld [vmem:[%s466_s2 + $0x38] sm:$0xff]   ;;  %s244_s18 = sshll.u32 %s378_s0, 4  ;;  %s245_s18 = int_to_ptr.vmem [resolvable:$true] %s244_s18 }
  0x14   :  { %317 = vmatpush3.bf16.msra.mxu1 %v347_v10  ;;  %s352_s19 = scalar_lea.vmem %s245_s18, 256  ;;  %p357_p1 = scmp.lt.s32.totalorder %s245_s18, %s245_s18 }
  0x15   :  { %318 = vmatprep.subr.bf16.mxu1 %v376_v1  ;;  %p353_p0 = scmp.ne.s32.totalorder %s245_s18, %s352_s19  ;;  %p358_p2 = scmp.lt.s32.totalorder %s352_s19, %s352_s19 }
  0x16   :  { %301 = vmatpush3.bf16.msra.mxu0 %v340_v9 }
  0x17   :  { %302 = vmatprep.subr.bf16.mxu0 %v376_v1  ;;  %p359_p3 = por %p358_p2, %p357_p1 }
  0x18   :  { %319 = vmatpush3.bf16.msra.mxu1 %v348_v12 }
  0x19   :  { %320 = vmatprep.subr.bf16.mxu1 %v376_v1  ;;  %p360_p4 = pnand %p359_p3, %p353_p0 }
  0x1a   :  { %303 = vmatpush3.bf16.msra.mxu0 %v341_v11 }
  0x1b   :  { %304 = vmatprep.subr.bf16.mxu0 %v376_v1 }
  0x1c   :  { %321 = vmatpush3.bf16.msra.mxu1 %v349_v14 }
  0x1d   :  { %322 = vmatprep.subr.bf16.mxu1 %v376_v1 }
  0x1e   :  { %305 = vmatpush3.bf16.msra.mxu0 %v342_v13 }
  0x20   :  { %323 = vmatpush3.bf16.msra.mxu1 %v350_v16 }
  0x21   :  { %307 = vmatmul.mubr.bf16.vlgmr.msra.gmra.mrb[0].mxu0 %v343_v15  ;;  %324 = vmatprep.subr.bf16.mxu1 %v376_v1 }
  0x24   :  { %325 = vmatpush3.bf16.msra.mxu1 %v351_v17 }
  0xf4   :  { %v122_v18 = vpop.f32.mrb[0].mxu0 }
  0xf5   :  { %v308_v19 = vpop.f32.mrb[1].mxu0  ;;  %v129_v21 = vmax.f32 %v122_v18, 0.0 }
  0xf6   :  { %v125_v20 = vpop.f32.mrb[2].mxu0 }
  0xf7   :  { %v130_v22 = vmax.f32 %v125_v20, 0.0  ;;  %v309_v23 = vpop.f32.mrb[3].mxu0 }
  0xf9   :  { %v131_v24 = vpack.c.bf16 %v130_v22, %v129_v21 }
  0xfb   :  { %327 = vmatmul.mubr.bf16.vlgmr.msra.gmra.mrb[0].mxu1 %v131_v24 }
 0x1ce   :  { %v230_v25 = vpop.f32.mrb[0].mxu1 }
 0x1cf   :  { %237 = vst [vmem:[#allocation2] sm:$0xff] %v230_v25  ;;  %v328_v26 = vpop.f32.mrb[1].mxu1 }
 0x1d0   :  { %v233_v27 = vpop.f32.mrb[2].mxu1 }
 0x1d1   :  { %238 = vst [vmem:[#allocation2 + $0x8] sm:$0xff] %v233_v27  ;;  %v329_v28 = vpop.f32.mrb[3].mxu1 }
 0x1d2   :  { %363 = shalt.err (!%p360_p4)
}
 0x1d3   :  { %s364_s21 = scalar_lea.hbm %s467_s3, 256 }
 0x1d4   :  { %p365_p5 = scmp.ne.s32.totalorder %s467_s3, %s364_s21  ;;  %p368_p6 = scmp.lt.u32.totalorder %s364_s21, %s467_s3 }
 0x1d6   :  { %p370_p7 = pnand %p368_p6, %p365_p5 }
 0x1d8   :  { %373 = shalt.err (!%p370_p7)
}
 0x1d9   :  { %s379_s26 = smov 128   ;;  %s380_s27 = smov 8  }
 0x1da   :  { %250 = dma.vmem_to_hbm [thread:$0]  %s245_s18, 256, %s467_s3, [#allocation3], %s379_s26, %s379_s26, %s380_s27  }
 0x1db   :  { %374 = dma.done.wait [#allocation3], 256  }
 0x1dc   :  { %375 = vsyncadd [#allocation3], 4294967040 }
 0x1dd   :  { %254 = vsyncpa [#allocation3], 1 }

</bundles_post_ra>
